<compile_context>
chip_gen: v6e
topology: v6e:2x2x1
jax: 0.10.0
libtpu: 0.0.40
codegen_flags: <defaults>
</compile_context>

<pallas_src>
import functools

import jax
import jax.numpy as jnp
from jax.experimental import pallas as pl
from jax.experimental.pallas import tpu as pltpu


TILE_BYTES = 4 * 1024 * 1024          # ~4 MiB per tile (in + out, x2 bufs = 16 MiB VMEM)
LANE_CANDIDATES = (1024, 512, 256, 128)


def _muladd_kernel(x_ref, o_ref):
    # Integer literals + weak typing keep the computation in the input dtype
    # (exact for f32/bf16; wraps for ints, matching PyTorch semantics).
    o_ref[...] = x_ref[...] * 2 + 1


@functools.partial(jax.jit, donate_argnums=0)
def pt_module_forward(x):
    """Equivalent of PtModule.forward: returns x * 2 + 1 (input buffer donated)."""
    orig_shape = x.shape
    n = x.size
    if n == 0:
        return x * 2 + 1  # empty tensor: trivial, preserves shape/dtype

    itemsize = jnp.dtype(x.dtype).itemsize
    sublane = max(8, 32 // itemsize)  # packed sublane count: 8 f32 / 16 bf16 / 32 int8

    # --- pick a lane-dense layout without padding whenever possible ---------
    lane = None
    for cand in LANE_CANDIDATES:
        if n % cand == 0:
            lane = cand
            break

    flat = x.reshape(-1)           # zero-copy bitcast of the donated buffer
    padded = False
    if lane is None:
        # TODO(synk): sizes not divisible by 128 fall back to a (cheap-ish but
        # copying) pad; a separate tail call would avoid the extra pass.
        lane = 128
        pad = (-n) % lane
        flat = jnp.pad(flat, (0, pad))
        padded = True

    rows = flat.size // lane
    x2d = flat.reshape(rows, lane)

    # --- tile size: ~TILE_BYTES, multiple of the packed sublane count -------
    cap = max(sublane, (TILE_BYTES // (lane * itemsize)) // sublane * sublane)
    if rows <= cap:
        if rows >= 2 * sublane:
            # Split into >=2 row tiles so v7x's two TensorCores both get work.
            tile_rows = pl.cdiv(pl.cdiv(rows, 2), sublane) * sublane
        else:
            # Single block covering the full array (block == full dims, so the
            # (8,128) divisibility rule does not apply to the row count).
            tile_rows = rows
    else:
        tile_rows = cap
    grid = (pl.cdiv(rows, tile_rows),)   # ragged last block: masked edge writes

    out2d = pl.pallas_call(
        _muladd_kernel,
        out_shape=jax.ShapeDtypeStruct((rows, lane), x.dtype),
        grid=grid,
        in_specs=[pl.BlockSpec((tile_rows, lane), lambda i: (i, 0))],
        out_specs=pl.BlockSpec((tile_rows, lane), lambda i: (i, 0)),
        compiler_params=pltpu.CompilerParams(
            # Independent row tiles: shard the grid across TensorCores (v7x).
            dimension_semantics=("parallel",),
            # 16 MiB pipelined footprint; raise v5e's 16 MiB scoped default,
            # stay inside v6e/v7x defaults and v7x's 64 MiB physical VMEM.
            vmem_limit_bytes=32 * 1024 * 1024,
        ),
        # Output reuses the donated input buffer: no defensive copy, no second
        # full-size HBM allocation.
        input_output_aliases={0: 0},
    )(x2d)

    if padded:
        return out2d.reshape(-1)[:n].reshape(orig_shape)
    return out2d.reshape(orig_shape)


if __name__ == "__main__":
    key = jax.random.PRNGKey(0)
    x = jax.random.normal(key, (2, 4, 16, 16), dtype=jnp.float32)

    # Reference computed BEFORE the call: x is donated to the kernel.
    ref = x * 2 + 1

    out = pt_module_forward(x)
    out = jax.block_until_ready(out)

    assert out.shape == ref.shape and out.dtype == ref.dtype
    assert jnp.allclose(out, ref, atol=1e-6), "mismatch vs reference"

    print("KERNEL_OK")
</pallas_src>

<mosaic_0001>
module attributes {stable_mosaic.version = 11 : i64} {
  func.func @_muladd_kernel(%arg0: i32, %arg1: memref<2x1024xf32, #tpu.memory_space<vmem>>, %arg2: memref<2x1024xf32, #tpu.memory_space<vmem>>) attributes {dimension_semantics = [#tpu.dimension_semantics<parallel>], iteration_bounds = array<i64: 1>, scalar_prefetch = 0 : i64, scratch_operands = 0 : i64, tpu.core_type = #tpu.core_type<tc>, window_params = [{transform_indices = @transform_0, window_bounds = array<i64: 2, 1024>}, {transform_indices = @transform_1, window_bounds = array<i64: 2, 1024>}]} {
    %c0 = arith.constant 0 : index
    %c0_0 = arith.constant 0 : index
    %0 = vector.load %arg1[%c0, %c0_0] : memref<2x1024xf32, #tpu.memory_space<vmem>>, vector<2x1024xf32>
    %cst = arith.constant 2.000000e+00 : f32
    %1 = vector.broadcast %cst : f32 to vector<2x1024xf32>
    %2 = arith.mulf %0, %1 : vector<2x1024xf32>
    %cst_1 = arith.constant 1.000000e+00 : f32
    %3 = vector.broadcast %cst_1 : f32 to vector<2x1024xf32>
    %4 = arith.addf %2, %3 : vector<2x1024xf32>
    %c0_2 = arith.constant 0 : index
    %c0_3 = arith.constant 0 : index
    %5 = vector.load %arg2[%c0_2, %c0_3] : memref<2x1024xf32, #tpu.memory_space<vmem>>, vector<2x1024xf32>
    tpu.vector_store %arg2[%c0_2, %c0_3], %4 {strides = array<i32>} : memref<2x1024xf32, #tpu.memory_space<vmem>>, vector<2x1024xf32>,
    return
  }
  func.func @transform_0(%arg0: i32) -> (i32, i32) {
    %c0_i32 = arith.constant 0 : i32
    %c0_i32_0 = arith.constant 0 : i32
    return %arg0, %c0_i32 : i32, i32
  }
  func.func @transform_1(%arg0: i32) -> (i32, i32) {
    %c0_i32 = arith.constant 0 : i32
    %c0_i32_0 = arith.constant 0 : i32
    return %arg0, %c0_i32 : i32, i32
  }
}

</mosaic_0001>

<bundles_post_ra>
// kernel: pt_module_forward.1
= control target key start
LH: loop header
LB: loop body
LE: loop exit
PB: predicated region body
PF: predicated region fallthrough
CT: control target
= control target key end

     0   :  { %s42_s0 = inlined_call_operand.vmem [shape: f32[2,1024], index: 0, kind: input, shape index: {}, may-alias: {0,1}]   ;;  %s43_s1 = inlined_call_operand.vmem [shape: f32[2,1024], index: 1, kind: output, shape index: {}, may-alias: {0,1}]  }
   0x1   :  { %v8_v0 = vld [vmem:[%s42_s0] sm:$0xff]  ;;  %v9_v1 = vld [vmem:[%s42_s0 + $0x8] sm:$0xff] }
   0x2   :  { %v10_v2 = vmul.f32 2.0, %v8_v0  ;;  %v11_v3 = vmul.f32 2.0, %v9_v1 }
   0x4   :  { %v12_v4 = vadd.f32 1.0, %v10_v2  ;;  %v13_v5 = vadd.f32 1.0, %v11_v3 }
   0x6   :  { %14 = vst [vmem:[%s43_s1] sm:$0xff] %v12_v4  ;;  %15 = vst [vmem:[%s43_s1 + $0x8] sm:$0xff] %v13_v5 }

</bundles_post_ra>
